<compile_context>
chip_gen: v7x
topology: tpu7x:2x2x1
jax: 0.10.0
libtpu: 0.0.40
codegen_flags: <defaults>
</compile_context>

<pallas_src>
import math
import functools

import jax
import jax.numpy as jnp
from jax.experimental import pallas as pl
from jax.experimental.pallas import tpu as pltpu


# ---------------------------------------------------------------------------
# Helpers: block-size selection (keeps BlockSpecs (8,128)-legal, grid >= 2 steps)
# ---------------------------------------------------------------------------
def _pick_batch_block(batch, seq_len, batch_block=None):
    """Largest bb with >= 2 grid steps and (bb*seq_len) % 8 == 0; fallback: whole batch."""
    if batch_block is not None:
        assert batch % batch_block == 0, "batch_block must divide batch"
        return batch_block
    for bb in range(batch // 2, 0, -1):
        if batch % bb == 0 and (bb * seq_len) % 8 == 0:
            return bb
    # Single full-array block always lowers (block == full array), pipelining lost.
    return batch


def _pick_row_block(total_rows, target=1024):
    """Largest multiple-of-8 divisor of total_rows that still gives >= 2 grid steps."""
    limit = min(total_rows // 2, target)
    for tr in range(limit, 0, -1):
        if total_rows % tr == 0 and tr % 8 == 0:
            return tr
    return total_rows


# ---------------------------------------------------------------------------
# Per-layer kernel: fused multi-head self-attention (+ optional fused LayerNorm)
# ---------------------------------------------------------------------------
def mha_layer_kernel(x_ref, wqkv_ref, bqkv_ref, wo_ref, bo_ref, ln_a_ref, ln_b_ref,
                     o_ref, *, n_heads, d_k, seq_len, batch_block, compute_dtype,
                     apply_ln, ln_eps, approx_softmax):
    d_model = n_heads * d_k
    rows = batch_block * seq_len

    x = x_ref[...]                       # (rows, D), already compute_dtype (host cast)
    w_qkv = wqkv_ref[...]                # (D, 3D),   already compute_dtype

    # Fused Q|K|V projection: one (rows, D) @ (D, 3D) MXU pass, f32 accumulation.
    # (1/sqrt(d_k) already folded into the Q columns / bias on the host.)
    qkv = jnp.dot(x, w_qkv, preferred_element_type=jnp.float32) + bqkv_ref[...]

    # Output accumulator (full D lane width -> lane-dense adds/stores, no scratch).
    acc = jnp.zeros((rows, d_model), jnp.float32)

    for h in range(n_heads):
        # Three narrow column views per head + free leading-dim reshape to (bb, S, d_k).
        q = qkv[:, h * d_k:(h + 1) * d_k]
        k = qkv[:, d_model + h * d_k: d_model + (h + 1) * d_k]
        v = qkv[:, 2 * d_model + h * d_k: 2 * d_model + (h + 1) * d_k]
        q = q.reshape(batch_block, seq_len, d_k).astype(compute_dtype)
        k = k.reshape(batch_block, seq_len, d_k).astype(compute_dtype)
        v = v.reshape(batch_block, seq_len, d_k).astype(compute_dtype)

        # Batched attention over the batch dim; contraction on the minor dim (no
        # materialized transpose).  Softmax stays in f32.
        s = jnp.einsum("bqc,bkc->bqk", q, k, preferred_element_type=jnp.float32)
        s = s - jnp.max(s, axis=-1, keepdims=True)
        p = jnp.exp(s)
        p = p * pl.reciprocal(jnp.sum(p, axis=-1, keepdims=True), approx=approx_softmax)
        # TODO(synk): training-mode attention dropout not implemented (eval mode).
        ctx = jnp.einsum("bqk,bkc->bqc", p.astype(compute_dtype), v,
                         preferred_element_type=jnp.float32)        # (bb, S, d_k) f32

        # Fold this head's context straight into the output projection: no per-head
        # d_k-wide stores, no (rows, D) scratch round trip.
        ctx = ctx.reshape(rows, d_k).astype(compute_dtype)
        wo_h = wo_ref[h * d_k:(h + 1) * d_k, :]                      # (d_k, D) view
        acc = acc + jnp.dot(ctx, wo_h, preferred_element_type=jnp.float32)

    out = acc + bo_ref[...]

    if apply_ln:
        # Final LayerNorm fused into the last layer's epilogue (PyTorch formula:
        # unbiased std, eps added to std).  One reciprocal per row (EUP slot).
        mean = jnp.mean(out, axis=-1, keepdims=True)
        xc = out - mean
        var = jnp.sum(xc * xc, axis=-1, keepdims=True) / (d_model - 1)
        inv = pl.reciprocal(jnp.sqrt(var) + ln_eps)
        out = ln_a_ref[...] * (xc * inv) + ln_b_ref[...]

    o_ref[...] = out.astype(o_ref.dtype)


def mha_self_attention(x, params, n_heads, *, batch_block=None,
                       compute_dtype=jnp.float32, approx_softmax=False,
                       fused_layer_norm=None, vmem_limit_bytes=None):
    """One encoder layer: multi-head self-attention (q = k = v = x), eval mode.

    x: (B, S, D) float32.  params: PyTorch-layout weights (w*: (out,in), b*: (out,)).
    batch_block: batch elements per grid step (auto -> largest bb giving >= 2 steps).
        On v7x (2 TCs, 64 MiB VMEM) pick bb so the slab fits ~48 MiB and n_blocks >= 2;
        on v5e/v6e (1 TC, 128 MiB VMEM) bias toward the largest slab with >= 2 steps.
    compute_dtype: jnp.bfloat16 recommended on v5e/v6e/v7x at real model sizes
        (weights/activations cast on the host; f32 accumulation + f32 softmax kept).
    fused_layer_norm: optional (a, b, eps) -> apply the final LayerNorm in-kernel.
    """
    B, S, D = x.shape
    assert D % n_heads == 0
    d_k = D // n_heads
    bb = _pick_batch_block(B, S, batch_block)
    n_blocks = B // bb
    rows = bb * S

    # PyTorch nn.Linear stores (out,in): transpose to (in,out).  Fold 1/sqrt(d_k)
    # into the Q weight/bias (free, host-side) and fuse Q|K|V into one weight.
    scale = 1.0 / math.sqrt(d_k)
    wqkv = jnp.concatenate(
        [params["wq"].T * scale, params["wk"].T, params["wv"].T], axis=1)   # (D, 3D)
    bqkv = jnp.concatenate(
        [params["bq"] * scale, params["bk"], params["bv"]]).reshape(1, 3 * D)
    wo = params["wo"].T                                                     # (D, D)
    bo = params["bo"].reshape(1, D)

    if fused_layer_norm is not None:
        ln_a, ln_b, ln_eps = fused_layer_norm
        apply_ln = True
    else:
        ln_a, ln_b, ln_eps = jnp.ones((D,), jnp.float32), jnp.zeros((D,), jnp.float32), 1e-6
        apply_ln = False

    # Host-side casts: halves HBM->VMEM DMA / VMEM residency when compute_dtype=bf16.
    x_flat = x.reshape(B * S, D).astype(compute_dtype)
    wqkv = wqkv.astype(compute_dtype)
    wo = wo.astype(compute_dtype)
    bqkv = bqkv.astype(jnp.float32)
    bo = bo.astype(jnp.float32)
    ln_a = ln_a.reshape(1, D).astype(jnp.float32)
    ln_b = ln_b.reshape(1, D).astype(jnp.float32)

    kernel = functools.partial(
        mha_layer_kernel, n_heads=n_heads, d_k=d_k, seq_len=S, batch_block=bb,
        compute_dtype=compute_dtype, apply_ln=apply_ln, ln_eps=ln_eps,
        approx_softmax=approx_softmax)

    compiler_kwargs = dict(dimension_semantics=("parallel",))
    if vmem_limit_bytes is not None:
        # TODO(synk): at real CLIP sizes (D >= 512) set this explicitly, esp. on v7x.
        compiler_kwargs["vmem_limit_bytes"] = vmem_limit_bytes

    out_flat = pl.pallas_call(
        kernel,
        out_shape=jax.ShapeDtypeStruct((B * S, D), x.dtype),
        grid_spec=pltpu.PrefetchScalarGridSpec(
            num_scalar_prefetch=0,
            grid=(n_blocks,),
            in_specs=[
                pl.BlockSpec((rows, D), lambda i: (i, 0)),        # activation slab
                pl.BlockSpec((D, 3 * D), lambda i: (0, 0)),       # fused W_qkv (resident)
                pl.BlockSpec((1, 3 * D), lambda i: (0, 0)),       # fused b_qkv
                pl.BlockSpec((D, D), lambda i: (0, 0)),           # W_o
                pl.BlockSpec((1, D), lambda i: (0, 0)),           # b_o
                pl.BlockSpec((1, D), lambda i: (0, 0)),           # ln_a (dummy if unused)
                pl.BlockSpec((1, D), lambda i: (0, 0)),           # ln_b (dummy if unused)
            ],
            out_specs=pl.BlockSpec((rows, D), lambda i: (i, 0)),
        ),
        compiler_params=pltpu.CompilerParams(**compiler_kwargs),
    )(x_flat, wqkv, bqkv, wo, bo, ln_a, ln_b)

    return out_flat.reshape(B, S, D)


# ---------------------------------------------------------------------------
# Standalone final LayerNorm (tiled over rows) — used only when there are no layers.
# Matches the PyTorch module: unbiased std, eps added to std.
# ---------------------------------------------------------------------------
def layer_norm_kernel(x_ref, a_ref, b_ref, o_ref, *, eps, n_features):
    x = x_ref[...].astype(jnp.float32)                   # (TR, D)
    mean = jnp.mean(x, axis=-1, keepdims=True)
    xc = x - mean
    var = jnp.sum(xc * xc, axis=-1, keepdims=True) / (n_features - 1)
    inv = pl.reciprocal(jnp.sqrt(var) + eps)             # one recip per row
    o_ref[...] = (a_ref[...] * (xc * inv) + b_ref[...]).astype(o_ref.dtype)


def layer_norm(x, a, b, eps=1e-6, row_block=None):
    B, S, D = x.shape
    rows_total = B * S
    tr = _pick_row_block(rows_total) if row_block is None else row_block
    x_flat = x.reshape(rows_total, D)
    kernel = functools.partial(layer_norm_kernel, eps=eps, n_features=D)
    out_flat = pl.pallas_call(
        kernel,
        out_shape=jax.ShapeDtypeStruct((rows_total, D), x.dtype),
        grid_spec=pltpu.PrefetchScalarGridSpec(
            num_scalar_prefetch=0,
            grid=(rows_total // tr,),
            in_specs=[pl.BlockSpec((tr, D), lambda i: (i, 0)),
                      pl.BlockSpec((1, D), lambda i: (0, 0)),
                      pl.BlockSpec((1, D), lambda i: (0, 0))],
            out_specs=pl.BlockSpec((tr, D), lambda i: (i, 0)),
        ),
        compiler_params=pltpu.CompilerParams(dimension_semantics=("parallel",)),
    )(x_flat, a.reshape(1, D).astype(jnp.float32), b.reshape(1, D).astype(jnp.float32))
    return out_flat.reshape(B, S, D)


# ---------------------------------------------------------------------------
# Encoder: stack of N layers + final LayerNorm (fused into the last layer)
# ---------------------------------------------------------------------------
def encoder_forward(x, layer_params, ln_a, ln_b, n_heads, *, batch_block=None,
                    compute_dtype=jnp.float32, ln_eps=1e-6, approx_softmax=False,
                    vmem_limit_bytes=None):
    # TODO(synk): the EncoderLayer definition (residual/FFN/mask structure) was not in
    # the provided spec; each layer is interpreted as multi-head self-attention.
    n = len(layer_params)
    if n == 0:
        return layer_norm(x, ln_a, ln_b, eps=ln_eps)
    for li, p in enumerate(layer_params):
        last = (li == n - 1)
        x = mha_self_attention(
            x, p, n_heads, batch_block=batch_block, compute_dtype=compute_dtype,
            approx_softmax=approx_softmax,
            fused_layer_norm=(ln_a, ln_b, ln_eps) if last else None,
            vmem_limit_bytes=vmem_limit_bytes)
    return x


# ---------------------------------------------------------------------------
# Pure-JAX reference (mirrors the PyTorch forward, eval mode)
# ---------------------------------------------------------------------------
def mha_reference(x, params, n_heads):
    B, S, D = x.shape
    d_k = D // n_heads
    hp = jax.lax.Precision.HIGHEST

    def lin(t, w, b):
        return jnp.dot(t, w.T, precision=hp) + b

    Q = lin(x, params["wq"], params["bq"]).reshape(B, S, n_heads, d_k).transpose(0, 2, 1, 3)
    K = lin(x, params["wk"], params["bk"]).reshape(B, S, n_heads, d_k).transpose(0, 2, 1, 3)
    V = lin(x, params["wv"], params["bv"]).reshape(B, S, n_heads, d_k).transpose(0, 2, 1, 3)
    scores = jnp.einsum("bhqd,bhkd->bhqk", Q, K, precision=hp) / math.sqrt(d_k)
    p = jax.nn.softmax(scores, axis=-1)
    ctx = jnp.einsum("bhqk,bhkd->bhqd", p, V, precision=hp).transpose(0, 2, 1, 3).reshape(B, S, D)
    return lin(ctx, params["wo"], params["bo"])


def encoder_reference(x, layer_params, ln_a, ln_b, n_heads, eps=1e-6):
    for p in layer_params:
        x = mha_reference(x, p, n_heads)
    mean = x.mean(-1, keepdims=True)
    xc = x - mean
    std = jnp.sqrt((xc * xc).sum(-1, keepdims=True) / (x.shape[-1] - 1))
    return ln_a * xc / (std + eps) + ln_b


def init_params(key, d_model):
    """Deterministic init matching nn.Linear's uniform(-1/sqrt(in), 1/sqrt(in))."""
    bound = 1.0 / math.sqrt(d_model)
    keys = jax.random.split(key, 8)
    p = {}
    for i, n in enumerate(["q", "k", "v", "o"]):
        p[f"w{n}"] = jax.random.uniform(keys[2 * i], (d_model, d_model),
                                        jnp.float32, -bound, bound)
        p[f"b{n}"] = jax.random.uniform(keys[2 * i + 1], (d_model,),
                                        jnp.float32, -bound, bound)
    return p


if __name__ == "__main__":
    B, S, D, H, N_LAYERS = 2, 8, 32, 4, 2   # batch, max_len, d_model, heads, layers

    root = jax.random.PRNGKey(0)
    kx, kp, ka, kb = jax.random.split(root, 4)
    x = jax.random.normal(kx, (B, S, D), jnp.float32)
    layer_params = [init_params(k, D) for k in jax.random.split(kp, N_LAYERS)]
    # Final LayerNorm params (module init is ones/zeros; use nearby non-trivial
    # values so the affine path is actually exercised).
    ln_a = 1.0 + 0.1 * jax.random.normal(ka, (D,), jnp.float32)
    ln_b = 0.1 * jax.random.normal(kb, (D,), jnp.float32)

    out = encoder_forward(x, layer_params, ln_a, ln_b, H)
    out = jax.block_until_ready(out)

    ref = encoder_reference(x, layer_params, ln_a, ln_b, H)
    assert out.shape == (B, S, D)
    assert jnp.allclose(out, ref, atol=5e-3, rtol=5e-3), "mismatch vs reference"

    print("KERNEL_OK")
</pallas_src>

<mosaic_0001>
module attributes {stable_mosaic.version = 11 : i64} {
  func.func @mha_layer_kernel(%arg0: i32, %arg1: memref<8x32xf32, #tpu.memory_space<vmem>>, %arg2: memref<32x96xf32, #tpu.memory_space<vmem>>, %arg3: memref<1x96xf32, #tpu.memory_space<vmem>>, %arg4: memref<32x32xf32, #tpu.memory_space<vmem>>, %arg5: memref<1x32xf32, #tpu.memory_space<vmem>>, %arg6: memref<1x32xf32, #tpu.memory_space<vmem>>, %arg7: memref<1x32xf32, #tpu.memory_space<vmem>>, %arg8: memref<8x32xf32, #tpu.memory_space<vmem>>) attributes {dimension_semantics = [#tpu.dimension_semantics<parallel>], iteration_bounds = array<i64: 2>, scalar_prefetch = 0 : i64, scratch_operands = 0 : i64, tpu.core_type = #tpu.core_type<tc>, window_params = [{transform_indices = @transform_0, window_bounds = array<i64: 8, 32>}, {pipeline_mode = #tpu.pipeline_mode<synchronous>, transform_indices = @transform_1, window_bounds = array<i64: 32, 96>}, {pipeline_mode = #tpu.pipeline_mode<synchronous>, transform_indices = @transform_2, window_bounds = array<i64: 1, 96>}, {pipeline_mode = #tpu.pipeline_mode<synchronous>, transform_indices = @transform_3, window_bounds = array<i64: 32, 32>}, {pipeline_mode = #tpu.pipeline_mode<synchronous>, transform_indices = @transform_4, window_bounds = array<i64: 1, 32>}, {pipeline_mode = #tpu.pipeline_mode<synchronous>, transform_indices = @transform_5, window_bounds = array<i64: 1, 32>}, {pipeline_mode = #tpu.pipeline_mode<synchronous>, transform_indices = @transform_6, window_bounds = array<i64: 1, 32>}, {transform_indices = @transform_7, window_bounds = array<i64: 8, 32>}]} {
    %c0 = arith.constant 0 : index
    %c0_0 = arith.constant 0 : index
    %0 = vector.load %arg1[%c0, %c0_0] : memref<8x32xf32, #tpu.memory_space<vmem>>, vector<8x32xf32>
    %c0_1 = arith.constant 0 : index
    %c0_2 = arith.constant 0 : index
    %1 = vector.load %arg2[%c0_1, %c0_2] : memref<32x96xf32, #tpu.memory_space<vmem>>, vector<32x96xf32>
    %cst = arith.constant dense<0.000000e+00> : vector<8x96xf32>
    %2 = tpu.matmul %0, %1, %cst {dimension_numbers = #tpu.dot_dimension_numbers<[1], [0], [0], [1], [0, 0, 1, 1], [], []>} : vector<8x32xf32>, vector<32x96xf32>, vector<8x96xf32> -> vector<8x96xf32>
    %c0_3 = arith.constant 0 : index
    %c0_4 = arith.constant 0 : index
    %3 = vector.load %arg3[%c0_3, %c0_4] : memref<1x96xf32, #tpu.memory_space<vmem>>, vector<1x96xf32>
    %4 = vector.broadcast %3 : vector<1x96xf32> to vector<8x96xf32>
    %5 = arith.addf %2, %4 : vector<8x96xf32>
    %cst_5 = arith.constant 0.000000e+00 : f32
    %6 = vector.broadcast %cst_5 : f32 to vector<8x32xf32>
    %7 = vector.extract_strided_slice %5 {offsets = [0, 0], sizes = [8, 8], strides = [1, 1]} : vector<8x96xf32> to vector<8x8xf32>
    %8 = vector.extract_strided_slice %5 {offsets = [0, 32], sizes = [8, 8], strides = [1, 1]} : vector<8x96xf32> to vector<8x8xf32>
    %9 = vector.extract_strided_slice %5 {offsets = [0, 64], sizes = [8, 8], strides = [1, 1]} : vector<8x96xf32> to vector<8x8xf32>
    %10 = vector.shape_cast %7 : vector<8x8xf32> to vector<1x8x8xf32>
    %11 = vector.shape_cast %8 : vector<8x8xf32> to vector<1x8x8xf32>
    %12 = vector.shape_cast %9 : vector<8x8xf32> to vector<1x8x8xf32>
    "tpu.trace_start"() <{level = 10 : i32, message = "bqc,bkc->bqk"}> : () -> ()
    %cst_6 = arith.constant dense<0.000000e+00> : vector<1x8x8xf32>
    %13 = tpu.matmul %10, %11, %cst_6 {dimension_numbers = #tpu.dot_dimension_numbers<[2], [2], [1], [1], [0, 0, 0, 1, 1, 1], [0], [0]>} : vector<1x8x8xf32>, vector<1x8x8xf32>, vector<1x8x8xf32> -> vector<1x8x8xf32>
    "tpu.trace_stop"() : () -> ()
    %cst_7 = arith.constant dense<0xFF800000> : vector<1x8xf32>
    %14 = vector.multi_reduction <maximumf>, %13, %cst_7 [2] : vector<1x8x8xf32> to vector<1x8xf32>
    %15 = vector.shape_cast %14 : vector<1x8xf32> to vector<1x8x1xf32>
    %16 = vector.broadcast %15 : vector<1x8x1xf32> to vector<1x8x8xf32>
    %17 = arith.subf %13, %16 : vector<1x8x8xf32>
    %18 = math.exp %17 : vector<1x8x8xf32>
    %cst_8 = arith.constant dense<0.000000e+00> : vector<1x8xf32>
    %19 = vector.multi_reduction <add>, %18, %cst_8 [2] : vector<1x8x8xf32> to vector<1x8xf32>
    %20 = vector.shape_cast %19 : vector<1x8xf32> to vector<1x8x1xf32>
    %21 = tpu.reciprocal %20 : vector<1x8x1xf32> -> vector<1x8x1xf32>
    %22 = vector.broadcast %21 : vector<1x8x1xf32> to vector<1x8x8xf32>
    %23 = arith.mulf %18, %22 : vector<1x8x8xf32>
    "tpu.trace_start"() <{level = 10 : i32, message = "bqk,bkc->bqc"}> : () -> ()
    %cst_9 = arith.constant dense<0.000000e+00> : vector<1x8x8xf32>
    %24 = tpu.matmul %23, %12, %cst_9 {dimension_numbers = #tpu.dot_dimension_numbers<[2], [1], [1], [2], [0, 0, 0, 1, 1, 2], [0], [0]>} : vector<1x8x8xf32>, vector<1x8x8xf32>, vector<1x8x8xf32> -> vector<1x8x8xf32>
    "tpu.trace_stop"() : () -> ()
    %25 = vector.shape_cast %24 : vector<1x8x8xf32> to vector<8x8xf32>
    %c0_10 = arith.constant 0 : index
    %c0_11 = arith.constant 0 : index
    %26 = vector.load %arg4[%c0_10, %c0_11] : memref<32x32xf32, #tpu.memory_space<vmem>>, vector<8x32xf32>
    %cst_12 = arith.constant dense<0.000000e+00> : vector<8x32xf32>
    %27 = tpu.matmul %25, %26, %cst_12 {dimension_numbers = #tpu.dot_dimension_numbers<[1], [0], [0], [1], [0, 0, 1, 1], [], []>} : vector<8x8xf32>, vector<8x32xf32>, vector<8x32xf32> -> vector<8x32xf32>
    %28 = arith.addf %6, %27 : vector<8x32xf32>
    %29 = vector.extract_strided_slice %5 {offsets = [0, 8], sizes = [8, 8], strides = [1, 1]} : vector<8x96xf32> to vector<8x8xf32>
    %30 = vector.extract_strided_slice %5 {offsets = [0, 40], sizes = [8, 8], strides = [1, 1]} : vector<8x96xf32> to vector<8x8xf32>
    %31 = vector.extract_strided_slice %5 {offsets = [0, 72], sizes = [8, 8], strides = [1, 1]} : vector<8x96xf32> to vector<8x8xf32>
    %32 = vector.shape_cast %29 : vector<8x8xf32> to vector<1x8x8xf32>
    %33 = vector.shape_cast %30 : vector<8x8xf32> to vector<1x8x8xf32>
    %34 = vector.shape_cast %31 : vector<8x8xf32> to vector<1x8x8xf32>
    "tpu.trace_start"() <{level = 10 : i32, message = "bqc,bkc->bqk"}> : () -> ()
    %cst_13 = arith.constant dense<0.000000e+00> : vector<1x8x8xf32>
    %35 = tpu.matmul %32, %33, %cst_13 {dimension_numbers = #tpu.dot_dimension_numbers<[2], [2], [1], [1], [0, 0, 0, 1, 1, 1], [0], [0]>} : vector<1x8x8xf32>, vector<1x8x8xf32>, vector<1x8x8xf32> -> vector<1x8x8xf32>
    "tpu.trace_stop"() : () -> ()
    %cst_14 = arith.constant dense<0xFF800000> : vector<1x8xf32>
    %36 = vector.multi_reduction <maximumf>, %35, %cst_14 [2] : vector<1x8x8xf32> to vector<1x8xf32>
    %37 = vector.shape_cast %36 : vector<1x8xf32> to vector<1x8x1xf32>
    %38 = vector.broadcast %37 : vector<1x8x1xf32> to vector<1x8x8xf32>
    %39 = arith.subf %35, %38 : vector<1x8x8xf32>
    %40 = math.exp %39 : vector<1x8x8xf32>
    %cst_15 = arith.constant dense<0.000000e+00> : vector<1x8xf32>
    %41 = vector.multi_reduction <add>, %40, %cst_15 [2] : vector<1x8x8xf32> to vector<1x8xf32>
    %42 = vector.shape_cast %41 : vector<1x8xf32> to vector<1x8x1xf32>
    %43 = tpu.reciprocal %42 : vector<1x8x1xf32> -> vector<1x8x1xf32>
    %44 = vector.broadcast %43 : vector<1x8x1xf32> to vector<1x8x8xf32>
    %45 = arith.mulf %40, %44 : vector<1x8x8xf32>
    "tpu.trace_start"() <{level = 10 : i32, message = "bqk,bkc->bqc"}> : () -> ()
    %cst_16 = arith.constant dense<0.000000e+00> : vector<1x8x8xf32>
    %46 = tpu.matmul %45, %34, %cst_16 {dimension_numbers = #tpu.dot_dimension_numbers<[2], [1], [1], [2], [0, 0, 0, 1, 1, 2], [0], [0]>} : vector<1x8x8xf32>, vector<1x8x8xf32>, vector<1x8x8xf32> -> vector<1x8x8xf32>
    "tpu.trace_stop"() : () -> ()
    %47 = vector.shape_cast %46 : vector<1x8x8xf32> to vector<8x8xf32>
    %c8 = arith.constant 8 : index
    %c0_17 = arith.constant 0 : index
    %48 = vector.load %arg4[%c8, %c0_17] : memref<32x32xf32, #tpu.memory_space<vmem>>, vector<8x32xf32>
    %cst_18 = arith.constant dense<0.000000e+00> : vector<8x32xf32>
    %49 = tpu.matmul %47, %48, %cst_18 {dimension_numbers = #tpu.dot_dimension_numbers<[1], [0], [0], [1], [0, 0, 1, 1], [], []>} : vector<8x8xf32>, vector<8x32xf32>, vector<8x32xf32> -> vector<8x32xf32>
    %50 = arith.addf %28, %49 : vector<8x32xf32>
    %51 = vector.extract_strided_slice %5 {offsets = [0, 16], sizes = [8, 8], strides = [1, 1]} : vector<8x96xf32> to vector<8x8xf32>
    %52 = vector.extract_strided_slice %5 {offsets = [0, 48], sizes = [8, 8], strides = [1, 1]} : vector<8x96xf32> to vector<8x8xf32>
    %53 = vector.extract_strided_slice %5 {offsets = [0, 80], sizes = [8, 8], strides = [1, 1]} : vector<8x96xf32> to vector<8x8xf32>
    %54 = vector.shape_cast %51 : vector<8x8xf32> to vector<1x8x8xf32>
    %55 = vector.shape_cast %52 : vector<8x8xf32> to vector<1x8x8xf32>
    %56 = vector.shape_cast %53 : vector<8x8xf32> to vector<1x8x8xf32>
    "tpu.trace_start"() <{level = 10 : i32, message = "bqc,bkc->bqk"}> : () -> ()
    %cst_19 = arith.constant dense<0.000000e+00> : vector<1x8x8xf32>
    %57 = tpu.matmul %54, %55, %cst_19 {dimension_numbers = #tpu.dot_dimension_numbers<[2], [2], [1], [1], [0, 0, 0, 1, 1, 1], [0], [0]>} : vector<1x8x8xf32>, vector<1x8x8xf32>, vector<1x8x8xf32> -> vector<1x8x8xf32>
    "tpu.trace_stop"() : () -> ()
    %cst_20 = arith.constant dense<0xFF800000> : vector<1x8xf32>
    %58 = vector.multi_reduction <maximumf>, %57, %cst_20 [2] : vector<1x8x8xf32> to vector<1x8xf32>
    %59 = vector.shape_cast %58 : vector<1x8xf32> to vector<1x8x1xf32>
    %60 = vector.broadcast %59 : vector<1x8x1xf32> to vector<1x8x8xf32>
    %61 = arith.subf %57, %60 : vector<1x8x8xf32>
    %62 = math.exp %61 : vector<1x8x8xf32>
    %cst_21 = arith.constant dense<0.000000e+00> : vector<1x8xf32>
    %63 = vector.multi_reduction <add>, %62, %cst_21 [2] : vector<1x8x8xf32> to vector<1x8xf32>
    %64 = vector.shape_cast %63 : vector<1x8xf32> to vector<1x8x1xf32>
    %65 = tpu.reciprocal %64 : vector<1x8x1xf32> -> vector<1x8x1xf32>
    %66 = vector.broadcast %65 : vector<1x8x1xf32> to vector<1x8x8xf32>
    %67 = arith.mulf %62, %66 : vector<1x8x8xf32>
    "tpu.trace_start"() <{level = 10 : i32, message = "bqk,bkc->bqc"}> : () -> ()
    %cst_22 = arith.constant dense<0.000000e+00> : vector<1x8x8xf32>
    %68 = tpu.matmul %67, %56, %cst_22 {dimension_numbers = #tpu.dot_dimension_numbers<[2], [1], [1], [2], [0, 0, 0, 1, 1, 2], [0], [0]>} : vector<1x8x8xf32>, vector<1x8x8xf32>, vector<1x8x8xf32> -> vector<1x8x8xf32>
    "tpu.trace_stop"() : () -> ()
    %69 = vector.shape_cast %68 : vector<1x8x8xf32> to vector<8x8xf32>
    %c16 = arith.constant 16 : index
    %c0_23 = arith.constant 0 : index
    %70 = vector.load %arg4[%c16, %c0_23] : memref<32x32xf32, #tpu.memory_space<vmem>>, vector<8x32xf32>
    %cst_24 = arith.constant dense<0.000000e+00> : vector<8x32xf32>
    %71 = tpu.matmul %69, %70, %cst_24 {dimension_numbers = #tpu.dot_dimension_numbers<[1], [0], [0], [1], [0, 0, 1, 1], [], []>} : vector<8x8xf32>, vector<8x32xf32>, vector<8x32xf32> -> vector<8x32xf32>
    %72 = arith.addf %50, %71 : vector<8x32xf32>
    %73 = vector.extract_strided_slice %5 {offsets = [0, 24], sizes = [8, 8], strides = [1, 1]} : vector<8x96xf32> to vector<8x8xf32>
    %74 = vector.extract_strided_slice %5 {offsets = [0, 56], sizes = [8, 8], strides = [1, 1]} : vector<8x96xf32> to vector<8x8xf32>
    %75 = vector.extract_strided_slice %5 {offsets = [0, 88], sizes = [8, 8], strides = [1, 1]} : vector<8x96xf32> to vector<8x8xf32>
    %76 = vector.shape_cast %73 : vector<8x8xf32> to vector<1x8x8xf32>
    %77 = vector.shape_cast %74 : vector<8x8xf32> to vector<1x8x8xf32>
    %78 = vector.shape_cast %75 : vector<8x8xf32> to vector<1x8x8xf32>
    "tpu.trace_start"() <{level = 10 : i32, message = "bqc,bkc->bqk"}> : () -> ()
    %cst_25 = arith.constant dense<0.000000e+00> : vector<1x8x8xf32>
    %79 = tpu.matmul %76, %77, %cst_25 {dimension_numbers = #tpu.dot_dimension_numbers<[2], [2], [1], [1], [0, 0, 0, 1, 1, 1], [0], [0]>} : vector<1x8x8xf32>, vector<1x8x8xf32>, vector<1x8x8xf32> -> vector<1x8x8xf32>
    "tpu.trace_stop"() : () -> ()
    %cst_26 = arith.constant dense<0xFF800000> : vector<1x8xf32>
    %80 = vector.multi_reduction <maximumf>, %79, %cst_26 [2] : vector<1x8x8xf32> to vector<1x8xf32>
    %81 = vector.shape_cast %80 : vector<1x8xf32> to vector<1x8x1xf32>
    %82 = vector.broadcast %81 : vector<1x8x1xf32> to vector<1x8x8xf32>
    %83 = arith.subf %79, %82 : vector<1x8x8xf32>
    %84 = math.exp %83 : vector<1x8x8xf32>
    %cst_27 = arith.constant dense<0.000000e+00> : vector<1x8xf32>
    %85 = vector.multi_reduction <add>, %84, %cst_27 [2] : vector<1x8x8xf32> to vector<1x8xf32>
    %86 = vector.shape_cast %85 : vector<1x8xf32> to vector<1x8x1xf32>
    %87 = tpu.reciprocal %86 : vector<1x8x1xf32> -> vector<1x8x1xf32>
    %88 = vector.broadcast %87 : vector<1x8x1xf32> to vector<1x8x8xf32>
    %89 = arith.mulf %84, %88 : vector<1x8x8xf32>
    "tpu.trace_start"() <{level = 10 : i32, message = "bqk,bkc->bqc"}> : () -> ()
    %cst_28 = arith.constant dense<0.000000e+00> : vector<1x8x8xf32>
    %90 = tpu.matmul %89, %78, %cst_28 {dimension_numbers = #tpu.dot_dimension_numbers<[2], [1], [1], [2], [0, 0, 0, 1, 1, 2], [0], [0]>} : vector<1x8x8xf32>, vector<1x8x8xf32>, vector<1x8x8xf32> -> vector<1x8x8xf32>
    "tpu.trace_stop"() : () -> ()
    %91 = vector.shape_cast %90 : vector<1x8x8xf32> to vector<8x8xf32>
    %c24 = arith.constant 24 : index
    %c0_29 = arith.constant 0 : index
    %92 = vector.load %arg4[%c24, %c0_29] : memref<32x32xf32, #tpu.memory_space<vmem>>, vector<8x32xf32>
    %cst_30 = arith.constant dense<0.000000e+00> : vector<8x32xf32>
    %93 = tpu.matmul %91, %92, %cst_30 {dimension_numbers = #tpu.dot_dimension_numbers<[1], [0], [0], [1], [0, 0, 1, 1], [], []>} : vector<8x8xf32>, vector<8x32xf32>, vector<8x32xf32> -> vector<8x32xf32>
    %94 = arith.addf %72, %93 : vector<8x32xf32>
    %c0_31 = arith.constant 0 : index
    %c0_32 = arith.constant 0 : index
    %95 = vector.load %arg5[%c0_31, %c0_32] : memref<1x32xf32, #tpu.memory_space<vmem>>, vector<1x32xf32>
    %96 = vector.broadcast %95 : vector<1x32xf32> to vector<8x32xf32>
    %97 = arith.addf %94, %96 : vector<8x32xf32>
    %c0_33 = arith.constant 0 : index
    %c0_34 = arith.constant 0 : index
    %98 = vector.load %arg8[%c0_33, %c0_34] : memref<8x32xf32, #tpu.memory_space<vmem>>, vector<8x32xf32>
    tpu.vector_store %arg8[%c0_33, %c0_34], %97 {strides = array<i32>} : memref<8x32xf32, #tpu.memory_space<vmem>>, vector<8x32xf32>,
    return
  }
  func.func @transform_0(%arg0: i32) -> (i32, i32) {
    %c0_i32 = arith.constant 0 : i32
    %c0_i32_0 = arith.constant 0 : i32
    return %arg0, %c0_i32 : i32, i32
  }
  func.func @transform_1(%arg0: i32) -> (i32, i32) {
    %c0_i32 = arith.constant 0 : i32
    %c0_i32_0 = arith.constant 0 : i32
    %c0_i32_1 = arith.constant 0 : i32
    return %c0_i32, %c0_i32_0 : i32, i32
  }
  func.func @transform_2(%arg0: i32) -> (i32, i32) {
    %c0_i32 = arith.constant 0 : i32
    %c0_i32_0 = arith.constant 0 : i32
    %c0_i32_1 = arith.constant 0 : i32
    return %c0_i32, %c0_i32_0 : i32, i32
  }
  func.func @transform_3(%arg0: i32) -> (i32, i32) {
    %c0_i32 = arith.constant 0 : i32
    %c0_i32_0 = arith.constant 0 : i32
    %c0_i32_1 = arith.constant 0 : i32
    return %c0_i32, %c0_i32_0 : i32, i32
  }
  func.func @transform_4(%arg0: i32) -> (i32, i32) {
    %c0_i32 = arith.constant 0 : i32
    %c0_i32_0 = arith.constant 0 : i32
    %c0_i32_1 = arith.constant 0 : i32
    return %c0_i32, %c0_i32_0 : i32, i32
  }
  func.func @transform_5(%arg0: i32) -> (i32, i32) {
    %c0_i32 = arith.constant 0 : i32
    %c0_i32_0 = arith.constant 0 : i32
    %c0_i32_1 = arith.constant 0 : i32
    return %c0_i32, %c0_i32_0 : i32, i32
  }
  func.func @transform_6(%arg0: i32) -> (i32, i32) {
    %c0_i32 = arith.constant 0 : i32
    %c0_i32_0 = arith.constant 0 : i32
    %c0_i32_1 = arith.constant 0 : i32
    return %c0_i32, %c0_i32_0 : i32, i32
  }
  func.func @transform_7(%arg0: i32) -> (i32, i32) {
    %c0_i32 = arith.constant 0 : i32
    %c0_i32_0 = arith.constant 0 : i32
    return %arg0, %c0_i32 : i32, i32
  }
}

</mosaic_0001>

<bundles_post_ra>
// kernel: tpu_custom_call.1
= control target key start
LH: loop header
LB: loop body
LE: loop exit
PB: predicated region body
PF: predicated region fallthrough
CT: control target
= control target key end

     0   :  { %12 = vsyncpa [#allocation3], 0  ;;  %s2254_s0 = inlined_call_operand.hbm [shape: f32[16,32], index: 0, kind: input, shape index: {}]   ;;  %s2255_s1 = inlined_call_operand.hbm [shape: f32[32,96], index: 1, kind: input, shape index: {}]   ;;  %s2256_s2 = inlined_call_operand.vmem [shape: f32[1,96], index: 2, kind: input, shape index: {}]   ;;  %s2257_s3 = inlined_call_operand.hbm [shape: f32[32,32], index: 3, kind: input, shape index: {}]   ;;  %s2258_s4 = inlined_call_operand.vmem [shape: f32[1,32], index: 4, kind: input, shape index: {}]   ;;  %s2259_s5 = inlined_call_operand.vmem [shape: f32[1,32], index: 5, kind: input, shape index: {}]   ;;  %s2260_s6 = inlined_call_operand.vmem [shape: f32[1,32], index: 6, kind: input, shape index: {}]   ;;  %s2261_s7 = inlined_call_operand.hbm [shape: f32[16,32], index: 7, kind: output, shape index: {}]  }
   0x1   :  { %14 = vsyncpa [#allocation3 + $0x1], 0 }
   0x2   :  { %15 = vsyncpa [#allocation6], 0 }
   0x3   :  { %16 = vsyncpa [#allocation4], 0 }
   0x4   :  { %18 = vsyncpa [#allocation4 + $0x1], 0  ;;  %s1937_s24 = smov 0   ;;  %s1939_s25 = smov 0  }
   0x5   :  { %s1941_s26 = smov 0   ;;  %s1943_s27 = smov 0  }
   0x6 LB: > { %s1958_s5 = sadd.s32 4294967295, %s1875_s27   ;;  %s1479_s6 = sadd.s32 4294967294, %s1875_s27   ;;  %s1875_s27 = sphi %s1943_s27, %s2281_s27   ;;  %s1871_s26 = sphi %s1941_s26, %s2280_s26   ;;  %s1867_s25 = sphi %s1939_s25, %s2279_s25   ;;  %s1863_s24 = sphi %s1937_s24, %s2278_s24  }
   0x7   : > { %p44_p0 = scmp.ne.s32.totalorder %s1867_s25, %s1863_s24  ;;  %p2262_p1 = scmp.eq.s32.totalorder %s1958_s5, 0 }
   0x8   : > { %p200_p3 = scmp.eq.s32.totalorder %s1479_s6, 1  ;;  %p1480_p5 = scmp.ge.s32.totalorder %s1875_s27, 1 }
   0x9   : > { %p1967_p4 = por %p2262_p1, %p44_p0  ;;  %p207_p7 = scmp.lt.s32.totalorder %s1875_s27, 3 }
   0xa   : > { %p1972_p6 = por %p200_p3, %p44_p0  ;;  %s1877_s8 = smov [#allocation5]  }
   0xb   : > { %s2265_s28 = scalar_select %p1967_p4, 1, 0 }
   0xc   : > { %s2266_s29 = scalar_select %p1972_p6, 1, 0 }
   0xd   : > { %p1977_p8 = pnand %p1480_p5, %p207_p7  ;;  %s219_s9 = sshll.u32 %s1877_s8, 4  ;;  %s1981_s9 = int_to_ptr.vmem [resolvable:$true] %s219_s9 }
   0xe   : > { %s1878_s11 = smov [#allocation7]   ;;  %s1719_s15 = scalar_lea.hbm %s2255_s1, 512 }
   0xf   : > { %p1632_p9 = pneg %p1977_p8  ;;  %s235_s12 = sshll.u32 %s1878_s11, 4  ;;  %s1992_s12 = int_to_ptr.vmem [resolvable:$true] %s235_s12 }
  0x10   : > { %p1720_p12 = scmp.ne.s32.totalorder %s2255_s1, %s1719_s15  ;;  %p1726_p5 = scmp.lt.u32.totalorder %s1719_s15, %s2255_s1 }
  0x11   : > { %p1988_p11 = pnand %p1632_p9, %p2262_p1 }
  0x13   : > { %p1721_p13 = pneg %p1988_p11 }
  0x15   : > { %p1722_p0 = pnand %p1721_p13, %p1720_p12 }
  0x17   : > { %p1723_p3 = pneg %p1722_p0 }
  0x19   : > { %p1728_p7 = pnand %p1726_p5, %p1723_p3 }
  0x1b   : > { %1731 = shalt.err (!%p1728_p7)
}
  0x1c   : > { %s1732_s20 = scalar_lea.vmem %s1981_s9, 512  ;;  %p1740_p2 = scmp.lt.s32.totalorder %s1981_s9, %s1981_s9 }
  0x1d   : > { %p1733_p9 = scmp.ne.s32.totalorder %s1981_s9, %s1732_s20  ;;  %p1741_p12 = scmp.lt.s32.totalorder %s1732_s20, %s1732_s20 }
  0x1f   : > { %p1735_p10 = pnand %p1733_p9, %p1721_p13  ;;  %p1742_p0 = por %p1741_p12, %p1740_p2 }
  0x21   : > { %p1736_p1 = pneg %p1735_p10 }
  0x23   : > { %p1743_p6 = pnand %p1742_p0, %p1736_p1 }
  0x25   : > { %1746 = shalt.err (!%p1743_p6)
}
  0x26   : > { %s1879_s21 = smov 128   ;;  %s1880_s22 = smov 8  }
  0x27   : > { %1635 = dma.hbm_to_vmem [thread:$0]  (!%p1988_p11), %s2255_s1, 512, %s1981_s9, [#allocation6], %s1879_s21, %s1879_s21, %s1880_s22  }
  0x28   : > { %s1747_s13 = scalar_lea.hbm %s2257_s3, 512 }
  0x29   : > { %p1748_p2 = scmp.ne.s32.totalorder %s2257_s3, %s1747_s13  ;;  %p1754_p10 = scmp.lt.u32.totalorder %s1747_s13, %s2257_s3 }
  0x2b   : > { %p1750_p1 = pnand %p1748_p2, %p1721_p13 }
  0x2d   : > { %p1751_p6 = pneg %p1750_p1 }
  0x2f   : > { %p1756_p3 = pnand %p1754_p10, %p1751_p6 }
  0x31   : > { %1759 = shalt.err (!%p1756_p3)
}
  0x32   : > { %s1760_s9 = scalar_lea.vmem %s1992_s12, 512  ;;  %p1768_p12 = scmp.lt.s32.totalorder %s1992_s12, %s1992_s12 }
  0x33   : > { %p1761_p5 = scmp.ne.s32.totalorder %s1992_s12, %s1760_s9  ;;  %p1769_p0 = scmp.lt.s32.totalorder %s1760_s9, %s1760_s9 }
  0x35   : > { %p1763_p7 = pnand %p1761_p5, %p1721_p13  ;;  %p1770_p2 = por %p1769_p0, %p1768_p12 }
  0x37   : > { %p1764_p9 = pneg %p1763_p7 }
  0x39   : > { %p1771_p1 = pnand %p1770_p2, %p1764_p9 }
  0x3b   : > { %1774 = shalt.err (!%p1771_p1)
}
  0x3c   : > { %1638 = dma.hbm_to_vmem [thread:$0]  (!%p1988_p11), %s2257_s3, 512, %s1992_s12, [#allocation6], %s1879_s21, %s1879_s21, %s1880_s22  }
  0x3d   : > { %s2047_s20 = sadd.s32 1, %s1875_s27   ;;  %s31_s10 = sadd.s32 1, %s1871_s26 }
  0x3e   : > { %s28_s23 = ssub.s32 %s1875_s27, %s2047_s20  ;;  %p38_p13 = scmp.ne.s32.totalorder %s1871_s26, %s1867_s25 }
  0x3f   : > { %p29_p6 = scmp.eq.s32.totalorder %s28_s23, 0  ;;  %p39_p10 = scmp.eq.s32.totalorder %s1875_s27, 0 }
  0x40   : > { %p2269_p3 = scmp.eq.s32.totalorder %s1958_s5, 1  ;;  %p1649_p7 = scmp.lt.s32.totalorder %s1875_s27, 2 }
  0x41   : > { %s2063_s8 = scalar_select %p29_p6, %s1871_s26, %s31_s10  }
  0x42   : > { %p2057_p5 = por %p2269_p3, %p38_p13  ;;  %p40_p9 = por %p39_p10, %p38_p13 }
  0x43   : > { %s258_s11 = sand.u32 1, %s1871_s26   ;;  %s1485_s12 = sshll.u32 %s1875_s27, 7 }
  0x44   : > { %s2270_s6 = scalar_select %p2057_p5, 1, 0 }
  0x45   : > { %s1484_s13 = sshll.u32 %s258_s11, 3  ;;  %s2070_s14 = scalar_lea.hbm %s2254_s0, %s1485_s12 }
  0x46   : > { %s262_s15 = scalar_lea.vmem [#allocation2], %s1484_s13  ;;  %p2074_p11 = pnand %p1649_p7, %p40_p9 }
  0x47   : > { %s269_s16 = sshll.u32 %s262_s15, 4  ;;  %s259_s9 = scalar_lea.sflag [#allocation3], %s258_s11  ;;  %s2072_s16 = int_to_ptr.vmem [resolvable:$true] %s269_s16 }
  0x48   : > { %s1775_s18 = scalar_lea.hbm %s2070_s14, 128  ;;  %p1777_p0 = pneg %p2074_p11 }
  0x49   : > { %p1776_p12 = scmp.ne.s32.totalorder %s2070_s14, %s1775_s18  ;;  %s1780_s23 = scalar_lea.hbm %s2254_s0, 256 }
  0x4a   : > { %p1781_p13 = scmp.lt.u32.totalorder %s2070_s14, %s2254_s0  ;;  %p1782_p6 = scmp.lt.u32.totalorder %s1780_s23, %s1775_s18 }
  0x4b   : > { %p1778_p2 = pnand %p1777_p0, %p1776_p12  ;;  %p1784_p3 = scmp.lt.u32.totalorder %s1775_s18, %s2070_s14 }
  0x4c   : > { %p1783_p10 = por %p1782_p6, %p1781_p13 }
  0x4d   : > { %p1779_p1 = pneg %p1778_p2 }
  0x4e   : > { %p1785_p7 = por %p1784_p3, %p1783_p10 }
  0x50   : > { %p1786_p9 = pnand %p1785_p7, %p1779_p1 }
  0x52   : > { %1789 = shalt.err (!%p1786_p9)
}
  0x53   : > { %s1790_s11 = scalar_lea.vmem %s2072_s16, 128  ;;  %s1881_s21 = smov [#allocation2]  }
  0x54   : > { %p1791_p12 = scmp.ne.s32.totalorder %s2072_s16, %s1790_s11  ;;  %s1795_s22 = sshll.u32 %s1881_s21, 4  ;;  %s1796_s22 = int_to_ptr.vmem [resolvable:$false] %s1795_s22 }
  0x55   : > { %s1797_s15 = scalar_lea.vmem %s1796_s22, 256  ;;  %p1798_p4 = scmp.lt.s32.totalorder %s2072_s16, %s1796_s22 }
  0x56   : > { %p1793_p2 = pnand %p1791_p12, %p1777_p0  ;;  %p1799_p13 = scmp.lt.s32.totalorder %s1797_s15, %s1790_s11 }
  0x58   : > { %p1794_p5 = pneg %p1793_p2  ;;  %p1800_p6 = por %p1799_p13, %p1798_p4 }
  0x5a   : > { %p1801_p10 = pnand %p1800_p6, %p1794_p5 }
  0x5c   : > { %1804 = shalt.err (!%p1801_p10)
}
  0x5d   : > { %1642 = dma.hbm_to_vmem [thread:$0]  (!%p2074_p11), %s2070_s14, 128, %s2072_s16, %s259_s9  }
  0x5e   : > { %278 = sbr.rel (%p1977_p8) target bundleno = 2691 (0xa83), region = 48  ;;  %s2106_s18 = sand.u32 (!%p1977_p8), 1, %s1867_s25  }
  0x5f   : > { %s1487_s19 = sshll.u32 (!%p1977_p8), %s2106_s18, 3  ;;  %s281_s10 = scalar_lea.sflag (!%p1977_p8), [#allocation3], %s2106_s18 }
  0x60   : > { %s284_s23 = scalar_lea.vmem (!%p1977_p8), [#allocation2], %s1487_s19  ;;  %p2272_p4 = scmp.ne.s32.totalorder (!%p1977_p8), %s2265_s28, 0 }
  0x65   : > { %1850 = dma.done.wait (%p2272_p4), %s281_s10, 128  }
  0x66   : > { %1852 = vsyncadd (%p2272_p4), %s281_s10, 4294967168  ;;  %p2273_p5 = scmp.eq.s32.totalorder %s1958_s5, 0 }
  0x68   : > { %1854 = dma.done.wait (%p2273_p5), [#allocation6], 1024   ;;  %p2274_p8 = pmov %p2273_p5 }
  0x69   : > { %v1882_v0 = vmov 0.0|0.0   ;;  %vm1883_vm0 = vmmov 0   ;;  %v1884_v1 = vmov 0.0   ;;  %v324_v2 = vld [vmem:[#allocation5] sm:$0xff]  ;;  %v325_v3 = vld [vmem:[#allocation5 + $0x8] sm:$0xff]  ;;  %v326_v4 = vld [vmem:[#allocation5 + $0x10] sm:$0xff] }
  0x6a   : > { %1856 = vsyncadd (%p2274_p8), [#allocation6], 4294966272  ;;  %1614 = vmatprep.subr.bf16.mxu0 %v1882_v0  ;;  %1551 = vmatprep.mubr.msk.f32.mxu0 %vm1883_vm0, %v1884_v1  ;;  %v1615_v5 = vpack.c.bf16 %v325_v3, %v324_v2  ;;  %v327_v6 = vld [vmem:[#allocation5 + $0x18] sm:$0xff]  ;;  %vm335_vm1 = vcmask 261120   ;;  %v1491_v9 = vld [vmem:[%s2256_s2] ss:$0 sm:$0xff] }
  0x6b   : > { %1554 = vmatprep.subr.mxu1 %v1884_v1  ;;  %1556 = vmatprep.mubr.msk.f32.mxu1 %vm1883_vm0, %v1884_v1  ;;  %v1618_v7 = vpack.c.bf16 %v327_v6, %v326_v4  ;;  %v323_v8 = vld [vmem:[%s284_s23] sm:$0xff]  ;;  %s1885_s14 = smov 120   ;;  %s1886_s16 = smov 96   ;;  %vm412_vm2 = vcmask 64512   ;;  %v740_v32 = vld [vmem:[#allocation7 + $0x8] sm:$0xff]  ;;  %v574_v41 = vld [vmem:[#allocation7] sm:$0xff] }
  0x6c   : > { %1616 = vmatpush3.bf16.msra.mxu0 %v1615_v5  ;;  %s1887_s17 = smov 88   ;;  %s1888_s9 = smov 56   ;;  %v1052_v4 = vld [vmem:[#allocation7 + $0x10] sm:$0xff] }
  0x6d   : > { %1617 = vmatprep.subr.bf16.mxu0 %v1882_v0  ;;  %s1889_s13 = smov 64   ;;  %s1890_s12 = smov 80  }
  0x6e   : > { %s1891_s11 = smov 112   ;;  %s1892_s21 = smov 72  }
  0x6f   : > { %s1893_s22 = smov 104   ;;  %s1894_s15 = smov 48  }
  0x70   : > { %1619 = vmatpush3.bf16.msra.mxu0 %v1618_v7  ;;  %s1895_s10 = smov 40   ;;  %s1511_s30 = sshll.u32 %s1958_s5, 7 }
  0x71   : > { %1564 = vmatprep.subr.mxu0 %v1884_v1  ;;  %p2275_p0 = scmp.ne.s32.totalorder %s2270_s6, 0 }
  0x73   : > { %1552 = vmatmul.mubr.msk.f32.vlgmr.msra.gmra.mrb[0].mxu0 %vm335_vm1, %v323_v8 }
  0x74   : > { %1566 = vmatprep.mubr.msk.f32.mxu0 %vm1883_vm0, %v1884_v1 }
 0x146   : > { %v405_v10 = vpop.f32.mrb[0].mxu0 }
 0x147   : > { %v2132_v11 = vadd.f32 %v1491_v9, %v405_v10  ;;  %v1553_v12 = vpop.f32.mrb[1].mxu0 }
 0x149   : > { %575 = vrot.lane.b32.xlu1 %v2132_v11, %s1885_s14  ;;  %410 = vrot.lane.b32.xlu0 %v2132_v11, %s1886_s16  ;;  %s322_s14 = scalar_lea.vmem [#allocation8], %s1487_s19  ;;  %s1896_s19 = smov [#allocation8]  }
 0x14a   : > { %s1390_s16 = sshll.u32 %s322_s14, 4  ;;  %s2211_s16 = int_to_ptr.vmem [resolvable:$true] %s1390_s16 }
 0x14b   : > { %s1805_s5 = scalar_lea.vmem %s2211_s16, 128 }
 0x14c   : > { %p1806_p11 = scmp.ne.s32.totalorder %s2211_s16, %s1805_s5 }
 0x14d   : > { %577 = vrot.lane.b32.xlu0 %v2132_v11, %s1887_s17 }
 0x14e   : > { %p1807_p1 = pnand %p1806_p11, %p2275_p0 }
 0x150   : > { %p1808_p3 = pneg %p1807_p1 }
 0x1bb   : > { %v411_v13 = vpop.permute.xlu0 %410  ;;  %v576_v15 = vpop.permute.xlu1 %575 }
 0x1bc   : > { %1555 = vmatpush3.xpose.msk.msra.mxu1 %vm412_vm2, %v411_v13 }
 0x1bd   : > { %1559 = vmatprep.subr.mxu1 %v1884_v1 }
 0x1bf   : > { %1557 = vmatmul.mubr.msk.f32.vlgmr.msra.gmra.mrb[0].mxu1 %vm412_vm2, %v2132_v11  ;;  %v578_v14 = vpop.permute.xlu0 %577 }
 0x1c0   : > { %1565 = vmatpush3.xpose.msk.msra.mxu0 %vm412_vm2, %v578_v14  ;;  %1561 = vmatprep.mubr.msk.f32.mxu1 %vm1883_vm0, %v1884_v1 }
 0x1c1   : > { %1574 = vmatprep.subr.mxu0 %v1884_v1 }
 0x1c3   : > { %1567 = vmatmul.mubr.msk.f32.vlgmr.msra.gmra.mrb[2].mxu0 %vm412_vm2, %v576_v15 }
 0x1c4   : > { %1576 = vmatprep.mubr.msk.f32.mxu0 %vm1883_vm0, %v1884_v1  ;;  %1575 = vmatpush3.msra.mxu0 %v740_v32 }
 0x1c5   : > { %1584 = vmatprep.subr.mxu0 %v1884_v1 }
 0x292   : > { %v483_v16 = vpop.f32.mrb[0].mxu1 }
 0x293   : > { %v1558_v17 = vpop.f32.mrb[1].mxu1  ;;  %v487_v18 = vsel %vm412_vm2, %v483_v16, -inf }
 0x294   : > { %488 = vmax.xlane.f32.xlu1 %v487_v18 }
 0x296   : > { %v649_v19 = vpop.f32.mrb[2].mxu0 }
 0x297   : > { %v1568_v20 = vpop.f32.mrb[3].mxu0  ;;  %v653_v21 = vsel %vm412_vm2, %v649_v19, -inf }
 0x298   : > { %654 = vmax.xlane.f32.xlu0 %v653_v21 }
 0x321   : > { %v489_v22 = vpop.xlane.xlu1 %488 }
 0x322   : > { %v490_v23 = vsub.f32 %v483_v16, %v489_v22 }
 0x324   : > { %v491_v24 = vmul.f32 1.442695, %v490_v23 }
 0x325   : > { %v655_v25 = vpop.xlane.xlu0 %654 }
 0x326   : > { %1703 = vpow2.f32 %v491_v24  ;;  %v656_v26 = vsub.f32 %v649_v19, %v655_v25  ;;  %v1509_v25 = vld [vmem:[%s2258_s4] ss:$0 sm:$0xff] }
 0x328   : > { %v657_v27 = vmul.f32 1.442695, %v656_v26 }
 0x32a   : > { %1705 = vpow2.f32 %v657_v27 }
 0x330   : > { %v1704_v28 = vpop.eup %1703 }
 0x331   : > { %v493_v29 = vsel %vm412_vm2, %v1704_v28, 0.0 }
 0x332   : > { %494 = vadd.xlane.f32.xlu0 %v493_v29 }
 0x334   : > { %v1706_v30 = vpop.eup %1705 }
 0x335   : > { %v659_v31 = vsel %vm412_vm2, %v1706_v30, 0.0 }
 0x336   : > { %660 = vadd.xlane.f32.xlu1 %v659_v31 }
 0x347   : > { %664 = vrot.lane.b32.xlu1 %v2132_v11, %s1888_s9 }
 0x348   : > { %498 = vrot.lane.b32.xlu0 %v2132_v11, %s1889_s13  ;;  %s2209_s13 = scalar_lea.hbm %s2261_s7, %s1511_s30 }
 0x34b   : > { %889 = vrot.lane.b32.xlu1 %v2132_v11, %s1890_s12  ;;  %s1377_s12 = scalar_lea.sflag [#allocation4], %s2106_s18 }
 0x34c   : > { %887 = vrot.lane.b32.xlu0 %v2132_v11, %s1891_s11  ;;  %s1809_s11 = sshll.u32 %s1896_s19, 4  ;;  %s1810_s11 = int_to_ptr.vmem [resolvable:$false] %s1809_s11 }
 0x34d   : > { %p1812_p7 = scmp.lt.s32.totalorder %s2211_s16, %s1810_s11 }
 0x3bf   : > { %v495_v33 = vpop.xlane.xlu0 %494 }
 0x3c0   : > { %1707 = vrcp.f32 %v495_v33 }
 0x3c3   : > { %v661_v34 = vpop.xlane.xlu1 %660  ;;  %v499_v35 = vpop.permute.xlu0 %498 }
 0x3c4   : > { %1709 = vrcp.f32 %v661_v34  ;;  %1560 = vmatpush3.msra.mxu1 %v499_v35 }
 0x3c5   : > { %1569 = vmatprep.subr.mxu1 %v1884_v1 }
 0x3c7   : > { %v665_v38 = vpop.permute.xlu1 %664  ;;  %v888_v47 = vpop.permute.xlu0 %887 }
 0x3ca   : > { %v1708_v36 = vpop.eup %1707 }
 0x3cb   : > { %v497_v37 = vmul.f32 %v1708_v36, %v1704_v28  ;;  %v890_v45 = vpop.permute.xlu1 %889 }
 0x3cd   : > { %1562 = vmatmul.mubr.msk.f32.vlgmr.msra.gmra.mrb[2].mxu1 %vm412_vm2, %v497_v37 }
 0x3ce   : > { %v1710_v39 = vpop.eup %1709  ;;  %1570 = vmatpush3.msra.mxu1 %v665_v38  ;;  %1571 = vmatprep.mubr.msk.f32.mxu1 %vm1883_vm0, %v1884_v1 }
 0x3cf   : > { %v663_v40 = vmul.f32 %v1710_v39, %v1706_v30  ;;  %1579 = vmatprep.subr.mxu1 %v1884_v1 }
 0x3d1   : > { %1572 = vmatmul.mubr.msk.f32.vlgmr.msra.gmra.mrb[4].mxu1 %vm412_vm2, %v663_v40 }
 0x3d2   : > { %1581 = vmatprep.mubr.msk.f32.mxu1 %vm1883_vm0, %v1884_v1  ;;  %1580 = vmatpush3.msra.mxu1 %v574_v41 }
 0x3d3   : > { %1589 = vmatprep.subr.mxu1 %v1884_v1 }
 0x4a0   : > { %v570_v42 = vpop.f32.mrb[2].mxu1 }
 0x4a1   : > { %v1563_v43 = vpop.f32.mrb[3].mxu1  ;;  %1582 = vmatmul.mubr.msk.f32.vlgmr.msra.gmra.mrb[6].mxu1 %vm412_vm2, %v570_v42 }
 0x4a2   : > { %1591 = vmatprep.mubr.msk.f32.mxu1 %vm1883_vm0, %v1884_v1 }
 0x4a4   : > { %v736_v44 = vpop.f32.mrb[4].mxu1 }
 0x4a5   : > { %v1573_v46 = vpop.f32.mrb[5].mxu1  ;;  %1577 = vmatmul.mubr.msk.f32.vlgmr.msra.gmra.mrb[4].mxu0 %vm412_vm2, %v736_v44 }
 0x4a6   : > { %1585 = vmatpush3.xpose.msk.msra.mxu0 %vm412_vm2, %v890_v45  ;;  %1586 = vmatprep.mubr.msk.f32.mxu0 %vm1883_vm0, %v1884_v1 }
 0x4a7   : > { %1594 = vmatprep.subr.mxu0 %v1884_v1 }
 0x4a9   : > { %1587 = vmatmul.mubr.msk.f32.vlgmr.msra.gmra.mrb[6].mxu0 %vm412_vm2, %v888_v47 }
 0x4aa   : > { %1596 = vmatprep.mubr.msk.f32.mxu0 %vm1883_vm0, %v1884_v1  ;;  %1595 = vmatpush3.msra.mxu0 %v1052_v4 }
 0x4ab   : > { %1604 = vmatprep.subr.mxu0 %v1884_v1 }
 0x574   : > { %v883_v48 = vpop.f32.mrb[6].mxu1 }
 0x575   : > { %v1583_v49 = vpop.f32.mrb[7].mxu1 }
 0x578   : > { %v810_v50 = vpop.f32.mrb[4].mxu0 }
 0x579   : > { %v884_v51 = vadd.f32 %v883_v48, %v810_v50  ;;  %v1578_v52 = vpop.f32.mrb[5].mxu0 }
 0x57c   : > { %v961_v53 = vpop.f32.mrb[6].mxu0 }
 0x57d   : > { %v1588_v54 = vpop.f32.mrb[7].mxu0  ;;  %v965_v55 = vsel %vm412_vm2, %v961_v53, -inf }
 0x57e   : > { %966 = vmax.xlane.f32.xlu1 %v965_v55 }
 0x58f   : > { %1129 = vrot.lane.b32.xlu1 %v2132_v11, %s1892_s21  ;;  %s1811_s21 = scalar_lea.vmem %s1810_s11, 256 }
 0x590   : > { %p1813_p9 = scmp.lt.s32.totalorder %s1811_s21, %s1805_s5 }
 0x592   : > { %p1814_p12 = por %p1813_p9, %p1812_p7 }
 0x593   : > { %1127 = vrot.lane.b32.xlu1 %v2132_v11, %s1893_s22 }
 0x594   : > { %p1815_p2 = pnand %p1814_p12, %p1808_p3 }
 0x60b   : > { %v967_v56 = vpop.xlane.xlu1 %966 }
 0x60c   : > { %v968_v57 = vsub.f32 %v961_v53, %v967_v56 }
 0x60e   : > { %v969_v58 = vmul.f32 1.442695, %v968_v57 }
 0x60f   : > { %v1130_v0 = vpop.permute.xlu1 %1129 }
 0x610   : > { %1711 = vpow2.f32 %v969_v58 }
 0x613   : > { %v1128_v3 = vpop.permute.xlu1 %1127 }
 0x61a   : > { %v1712_v59 = vpop.eup %1711 }
 0x61b   : > { %v971_v60 = vsel %vm412_vm2, %v1712_v59, 0.0 }
 0x61c   : > { %972 = vadd.xlane.f32.xlu0 %v971_v60 }
 0x632   : > { %976 = vrot.lane.b32.xlu0 %v2132_v11, %s1894_s15 }
 0x6a9   : > { %v973_v61 = vpop.xlane.xlu0 %972 }
 0x6aa   : > { %1713 = vrcp.f32 %v973_v61 }
 0x6ad   : > { %v977_v62 = vpop.permute.xlu0 %976 }
 0x6ae   : > { %1590 = vmatpush3.msra.mxu1 %v977_v62 }
 0x6af   : > { %1599 = vmatprep.subr.mxu1 %v1884_v1 }
 0x6b4   : > { %v1714_v63 = vpop.eup %1713 }
 0x6b5   : > { %v975_v2 = vmul.f32 %v1714_v63, %v1712_v59 }
 0x6b7   : > { %1592 = vmatmul.mubr.msk.f32.vlgmr.msra.gmra.mrb[8].mxu1 %vm412_vm2, %v975_v2 }
 0x6b8   : > { %1600 = vmatpush3.xpose.msk.msra.mxu1 %vm412_vm2, %v1130_v0  ;;  %1601 = vmatprep.mubr.msk.f32.mxu1 %vm1883_vm0, %v1884_v1 }
 0x6b9   : > { %1609 = vmatprep.subr.mxu1 %v1884_v1 }
 0x6bb   : > { %1602 = vmatmul.mubr.msk.f32.vlgmr.msra.gmra.mrb[10].mxu1 %vm412_vm2, %v1128_v3 }
 0x6bc   : > { %1611 = vmatprep.mubr.msk.f32.mxu1 %vm1883_vm0, %v1884_v1 }
 0x78a   : > { %v1048_v5 = vpop.f32.mrb[8].mxu1 }
 0x78b   : > { %v1593_v6 = vpop.f32.mrb[9].mxu1  ;;  %1597 = vmatmul.mubr.msk.f32.vlgmr.msra.gmra.mrb[8].mxu0 %vm412_vm2, %v1048_v5 }
 0x78c   : > { %1606 = vmatprep.mubr.msk.f32.mxu0 %vm1883_vm0, %v1884_v1  ;;  %v1292_v1 = vld [vmem:[#allocation7 + $0x18] sm:$0xff] }
 0x78d   : > { %1610 = vmatpush3.msra.mxu1 %v1292_v1 }
 0x78e   : > { %v1201_v7 = vpop.f32.mrb[10].mxu1 }
 0x78f   : > { %v1603_v8 = vpop.f32.mrb[11].mxu1  ;;  %v1205_v9 = vsel %vm412_vm2, %v1201_v7, -inf }
 0x790   : > { %1206 = vmax.xlane.f32.xlu0 %v1205_v9 }
 0x7a6   : > { %1216 = vrot.lane.b32.xlu0 %v2132_v11, %s1895_s10 }
 0x81d   : > { %v1207_v10 = vpop.xlane.xlu0 %1206 }
 0x81e   : > { %v1208_v12 = vsub.f32 %v1201_v7, %v1207_v10 }
 0x820   : > { %v1209_v13 = vmul.f32 1.442695, %v1208_v12 }
 0x821   : > { %v1217_v14 = vpop.permute.xlu0 %1216 }
 0x822   : > { %1715 = vpow2.f32 %v1209_v13  ;;  %1605 = vmatpush3.msra.mxu0 %v1217_v14 }
 0x82c   : > { %v1716_v15 = vpop.eup %1715 }
 0x82d   : > { %v1211_v16 = vsel %vm412_vm2, %v1716_v15, 0.0 }
 0x82e   : > { %1212 = vadd.xlane.f32.xlu1 %v1211_v16 }
 0x85e   : > { %v1122_v17 = vpop.f32.mrb[8].mxu0 }
 0x85f   : > { %v1126_v18 = vadd.f32 %v1122_v17, %v884_v51  ;;  %v1598_v19 = vpop.f32.mrb[9].mxu0 }
 0x8bb   : > { %v1213_v20 = vpop.xlane.xlu1 %1212 }
 0x8bc   : > { %1717 = vrcp.f32 %v1213_v20 }
 0x8c6   : > { %v1718_v11 = vpop.eup %1717 }
 0x8c7   : > { %v1215_v21 = vmul.f32 %v1718_v11, %v1716_v15 }
 0x8c9   : > { %1607 = vmatmul.mubr.msk.f32.vlgmr.msra.gmra.mrb[10].mxu0 %vm412_vm2, %v1215_v21 }
 0x99c   : > { %v1288_v22 = vpop.f32.mrb[10].mxu0 }
 0x99d   : > { %v1608_v23 = vpop.f32.mrb[11].mxu0  ;;  %1612 = vmatmul.mubr.msk.f32.vlgmr.msra.gmra.mrb[12].mxu1 %vm412_vm2, %v1288_v22 }
 0xa70   : > { %v1362_v24 = vpop.f32.mrb[12].mxu1 }
 0xa71   : > { %v1366_v26 = vadd.f32 %v1362_v24, %v1126_v18  ;;  %v1613_v27 = vpop.f32.mrb[13].mxu1 }
 0xa73   : > { %v1374_v28 = vadd.f32 %v1509_v25, %v1366_v26 }
 0xa75   : > { %1375 = vst.msk [vmem:[%s322_s14] sm:$0xff] %vm335_vm1, %v1374_v28 }
 0xa76   : > { %1818 = shalt.err (!%p1815_p2)
}
 0xa77   : > { %s1819_s18 = scalar_lea.hbm %s2209_s13, 128  ;;  %s1823_s10 = scalar_lea.hbm %s2261_s7, 256 }
 0xa78   : > { %p1820_p13 = scmp.ne.s32.totalorder %s2209_s13, %s1819_s18  ;;  %p1824_p4 = scmp.lt.u32.totalorder %s2209_s13, %s2261_s7 }
 0xa79   : > { %p1825_p5 = scmp.lt.u32.totalorder %s1823_s10, %s1819_s18  ;;  %p1827_p11 = scmp.lt.u32.totalorder %s1819_s18, %s2209_s13 }
 0xa7a   : > { %p1821_p6 = pnand %p1820_p13, %p2275_p0 }
 0xa7b   : > { %p1826_p8 = por %p1825_p5, %p1824_p4 }
 0xa7c   : > { %p1822_p10 = pneg %p1821_p6 }
 0xa7d   : > { %p1828_p1 = por %p1827_p11, %p1826_p8 }
 0xa7f   : > { %p1829_p3 = pnand %p1828_p1, %p1822_p10 }
 0xa81   : > { %1832 = shalt.err (!%p1829_p3)
}
 0xa82   : > { %1630 = dma.vmem_to_hbm [thread:$0]  (%p2275_p0), %s2211_s16, 128, %s2209_s13, %s1377_s12  }
 0xa83 PF: > { %s1402_s30 = sand.u32 1, %s1863_s24   ;;  %p2276_p7 = scmp.ne.s32.totalorder %s2266_s29, 0 }
 0xa84   : > { %p2277_p9 = scmp.ge.s32.totalorder %s1875_s27, 2  ;;  %s1403_s14 = scalar_lea.sflag [#allocation4], %s1402_s30 }
 0xa86   : > { %p1644_p12 = pnand %p2277_p9, %p2276_p7 }
 0xa88   : > { %1858 = dma.done.wait (!%p1644_p12), %s1403_s14, 128  }
 0xa89   : > { %1860 = vsyncadd (!%p1644_p12), %s1403_s14, 4294967168  ;;  %p21_p2 = scmp.ge.s32.totalorder %s2047_s20, 4   ;;  %s2278_s24 = smov %s1867_s25 }
 0xa8a   : > { %s2279_s25 = smov %s1871_s26  ;;  %s2280_s26 = smov %s2063_s8 }
 0xa8b   : > { %s2281_s27 = smov %s2047_s20  ;;  %23 = sbr.rel (!%p21_p2) target bundleno = 6 (0x6), region = 101 }
 0xa92   :  { %1408 = vsyncpa [#allocation3], 1 }
 0xa93   :  { %1410 = vsyncpa [#allocation3 + $0x1], 1 }
 0xa94   :  { %1411 = vsyncpa [#allocation6], 1 }
 0xa95   :  { %1412 = vsyncpa [#allocation4], 1 }
 0xa96   :  { %1414 = vsyncpa [#allocation4 + $0x1], 1 }

</bundles_post_ra>
